<compile_context>
chip_gen: v7x
topology: tpu7x:2x2x1
jax: 0.10.0
libtpu: 0.0.40
codegen_flags: <defaults>
</compile_context>

<pallas_src>
import functools

import jax
import jax.numpy as jnp
import numpy as np
from jax import lax
from jax.experimental import pallas as pl
from jax.experimental.pallas import tpu as pltpu

LANE = 128


# --------------------------------------------------------------------------- #
# layout plumbing: (N, C, H, W) <-> lane-dense (N, G, 128)
# --------------------------------------------------------------------------- #
def _to_lane_dense(x):
    """Flatten per-row payload and reshape to (N, G, 128) (zero-padded)."""
    n = x.shape[0]
    d = int(np.prod(x.shape[1:]))
    dp = ((d + LANE - 1) // LANE) * LANE
    xf = x.reshape(n, d)
    if dp != d:
        xf = jnp.pad(xf, ((0, 0), (0, dp - d)))
    return xf.reshape(n, dp // LANE, LANE)


def _from_lane_dense(xf, orig_shape):
    n = xf.shape[0]
    d = int(np.prod(orig_shape[1:]))
    return xf.reshape(n, -1)[:, :d].reshape((n,) + tuple(orig_shape[1:]))


# --------------------------------------------------------------------------- #
# full-queue case: single grid step, fused permute + dequeue + front-enqueue
# --------------------------------------------------------------------------- #
def _full_kernel(perm_ref, qq_ref, qk_ref, iq_ref, ik_ref,
                 nq_ref, nk_ref, dq_ref, dk_ref, *, b, q, unroll):
    # dequeue = first b permuted old rows (read once, written only to dq/dk;
    # the corresponding new-queue rows are the incoming batch anyway).
    def deq_body(i, carry):
        p = perm_ref[i]
        dq_ref[pl.ds(i, 1)] = qq_ref[pl.ds(p, 1)]
        dk_ref[pl.ds(i, 1)] = qk_ref[pl.ds(p, 1)]
        return carry

    lax.fori_loop(0, b, deq_body, 0, unroll=unroll)

    # remaining new-queue rows = permuted old rows.
    def gather_body(i, carry):
        p = perm_ref[i]
        nq_ref[pl.ds(i, 1)] = qq_ref[pl.ds(p, 1)]
        nk_ref[pl.ds(i, 1)] = qk_ref[pl.ds(p, 1)]
        return carry

    lax.fori_loop(b, q, gather_body, 0, unroll=unroll)

    # front-enqueue the incoming batch (one contiguous VMEM store per queue).
    nq_ref[pl.ds(0, b)] = iq_ref[...]
    nk_ref[pl.ds(0, b)] = ik_ref[...]


def _full_case(qq, qk, iq, ik, perm):
    Q, G, L = qq.shape
    b = iq.shape[0]
    kernel = functools.partial(_full_kernel, b=b, q=Q, unroll=(Q <= 64))
    vmem = pl.BlockSpec(memory_space=pltpu.MemorySpace.VMEM)
    return pl.pallas_call(
        kernel,
        in_specs=[
            pl.BlockSpec(memory_space=pltpu.MemorySpace.SMEM),  # perm
            vmem,                                               # queue_q
            vmem,                                               # queue_k
            vmem,                                               # query batch
            vmem,                                               # key batch
        ],
        out_specs=(vmem, vmem, vmem, vmem),
        out_shape=(
            jax.ShapeDtypeStruct((Q, G, L), qq.dtype),   # new queue_q
            jax.ShapeDtypeStruct((Q, G, L), qk.dtype),   # new queue_k
            jax.ShapeDtypeStruct((b, G, L), iq.dtype),   # q_dequeue
            jax.ShapeDtypeStruct((b, G, L), ik.dtype),   # k_dequeue
        ),
    )(perm, qq, qk, iq, ik)


# --------------------------------------------------------------------------- #
# not-full case: one contiguous (b, G, 128) block scatter (io-aliased, P8)
# --------------------------------------------------------------------------- #
def _enqueue_kernel(qq_hbm, qk_hbm, iq_ref, ik_ref, oq_ref, ok_ref):
    # qq_hbm / qk_hbm are aliased to the outputs; untouched rows keep old data.
    del qq_hbm, qk_hbm
    oq_ref[...] = iq_ref[...]
    ok_ref[...] = ik_ref[...]


def _enqueue_at(qq, qk, iq, ik, ptr):
    Q, G, L = qq.shape
    b = iq.shape[0]
    # ptr advances by b and Q % b == 0, so ptr is always a multiple of b.
    assert ptr % b == 0, "queue_ptr must be a multiple of the batch size"
    block_idx = ptr // b
    blk = (b, G, L)
    return pl.pallas_call(
        _enqueue_kernel,
        grid=(1,),
        in_specs=[
            pl.BlockSpec(memory_space=pl.ANY),          # queue_q (aliased, never read)
            pl.BlockSpec(memory_space=pl.ANY),          # queue_k (aliased, never read)
            pl.BlockSpec(blk, lambda i: (0, 0, 0)),     # whole query batch
            pl.BlockSpec(blk, lambda i: (0, 0, 0)),     # whole key   batch
        ],
        out_specs=[
            pl.BlockSpec(blk, lambda i: (block_idx, 0, 0)),
            pl.BlockSpec(blk, lambda i: (block_idx, 0, 0)),
        ],
        out_shape=(jax.ShapeDtypeStruct((Q, G, L), qq.dtype),
                   jax.ShapeDtypeStruct((Q, G, L), qk.dtype)),
        input_output_aliases={0: 0, 1: 1},
    )(qq, qk, iq, ik)


# --------------------------------------------------------------------------- #
# functional forward (state == 'degrade')
# --------------------------------------------------------------------------- #
def dequeue_and_enqueue_degrade(queue_q, queue_k, ptr, query, key, perm_idx):
    """Returns (new_queue_q, new_queue_k, new_ptr, q_dequeue, k_dequeue).

    `ptr` is a Python int (queue_ptr attribute of the module); `perm_idx`
    plays the role of torch.randperm(queue_size).
    """
    Q = queue_q.shape[0]
    b = query.shape[0]
    ptr = int(ptr)
    assert Q % b == 0, "queue_size must be divisible by batch size"
    assert ptr == Q or ptr + b <= Q

    qq_f = _to_lane_dense(queue_q)
    qk_f = _to_lane_dense(queue_k)
    iq_f = _to_lane_dense(query)
    ik_f = _to_lane_dense(key)

    if ptr == Q:
        # full: permute, dequeue the front b (pre-overwrite), enqueue inp at front
        perm = perm_idx.astype(jnp.int32)
        new_q_f, new_k_f, dq_f, dk_f = _full_case(qq_f, qk_f, iq_f, ik_f, perm)
        q_deq = _from_lane_dense(dq_f, query.shape)
        k_deq = _from_lane_dense(dk_f, key.shape)
        new_ptr = ptr
    else:
        # not full: contiguous enqueue at ptr, return inputs unchanged
        new_q_f, new_k_f = _enqueue_at(qq_f, qk_f, iq_f, ik_f, ptr)
        q_deq, k_deq = query, key
        new_ptr = ptr + b

    new_q = _from_lane_dense(new_q_f, queue_q.shape)
    new_k = _from_lane_dense(new_k_f, queue_k.shape)
    return new_q, new_k, new_ptr, q_deq, k_deq


# ----------------------------- reference (plain JAX, for checking) ---------- #
def _ref_forward(queue_q, queue_k, ptr, query, key, perm_idx):
    Q = queue_q.shape[0]
    b = query.shape[0]
    if int(ptr) == Q:
        qq = queue_q[perm_idx]
        qk = queue_k[perm_idx]
        q_deq = qq[:b]
        k_deq = qk[:b]
        qq = qq.at[:b].set(query)
        qk = qk.at[:b].set(key)
        return qq, qk, ptr, q_deq, k_deq
    else:
        qq = queue_q.at[ptr:ptr + b].set(query)
        qk = queue_k.at[ptr:ptr + b].set(key)
        return qq, qk, ptr + b, query, key


if __name__ == "__main__":
    # config: total_batch_size=2, inp_size=16, scale=2, queue_size=8 -> c=1,h=16,w=32
    B, C, H, W = 2, 1, 16, 32
    Q = 8

    rng = jax.random.PRNGKey(0)
    k1, k2, k3, k4, k5 = jax.random.split(rng, 5)

    query = jax.random.normal(k1, (B, C, H, W), jnp.float32)
    key_t = jax.random.normal(k2, (B, C, H, W), jnp.float32)
    perm_idx = jax.random.permutation(k3, Q).astype(jnp.int32)

    queue_q = jax.random.normal(k4, (Q, C, H, W), jnp.float32)
    queue_k = jax.random.normal(k5, (Q, C, H, W), jnp.float32)

    # --- case 1: queue not yet full (ptr = 2) --------------------------------
    ptr = 2
    out = dequeue_and_enqueue_degrade(queue_q, queue_k, ptr, query, key_t, perm_idx)
    out = jax.block_until_ready(out)
    ref = _ref_forward(queue_q, queue_k, ptr, query, key_t, perm_idx)
    for o, r in zip(out, ref):
        np.testing.assert_allclose(np.asarray(o), np.asarray(r), rtol=0, atol=0)

    # --- case 2: queue full (ptr = Q) -> permute, dequeue, enqueue at front ---
    ptr_full = Q
    out_f = dequeue_and_enqueue_degrade(queue_q, queue_k, ptr_full, query, key_t, perm_idx)
    out_f = jax.block_until_ready(out_f)
    ref_f = _ref_forward(queue_q, queue_k, ptr_full, query, key_t, perm_idx)
    for o, r in zip(out_f, ref_f):
        np.testing.assert_allclose(np.asarray(o), np.asarray(r), rtol=0, atol=0)

    print("KERNEL_OK")
</pallas_src>

<mosaic_0001>
module attributes {stable_mosaic.version = 11 : i64} {
  func.func @_enqueue_kernel(%arg0: i32, %arg1: memref<8x4x128xf32, #tpu.memory_space<any>>, %arg2: memref<8x4x128xf32, #tpu.memory_space<any>>, %arg3: memref<2x4x128xf32, #tpu.memory_space<vmem>>, %arg4: memref<2x4x128xf32, #tpu.memory_space<vmem>>, %arg5: memref<2x4x128xf32, #tpu.memory_space<vmem>>, %arg6: memref<2x4x128xf32, #tpu.memory_space<vmem>>) attributes {dimension_semantics = [#tpu.dimension_semantics<arbitrary>], iteration_bounds = array<i64: 1>, scalar_prefetch = 0 : i64, scratch_operands = 0 : i64, tpu.core_type = #tpu.core_type<tc>, window_params = [{}, {}, {pipeline_mode = #tpu.pipeline_mode<synchronous>, transform_indices = @transform_2, window_bounds = array<i64: 2, 4, 128>}, {pipeline_mode = #tpu.pipeline_mode<synchronous>, transform_indices = @transform_3, window_bounds = array<i64: 2, 4, 128>}, {transform_indices = @transform_4, window_bounds = array<i64: 2, 4, 128>}, {transform_indices = @transform_5, window_bounds = array<i64: 2, 4, 128>}]} {
    %c0 = arith.constant 0 : index
    %c0_0 = arith.constant 0 : index
    %c0_1 = arith.constant 0 : index
    %0 = vector.load %arg3[%c0, %c0_0, %c0_1] : memref<2x4x128xf32, #tpu.memory_space<vmem>>, vector<2x4x128xf32>
    %c0_2 = arith.constant 0 : index
    %c0_3 = arith.constant 0 : index
    %c0_4 = arith.constant 0 : index
    %1 = vector.load %arg5[%c0_2, %c0_3, %c0_4] : memref<2x4x128xf32, #tpu.memory_space<vmem>>, vector<2x4x128xf32>
    tpu.vector_store %arg5[%c0_2, %c0_3, %c0_4], %0 {strides = array<i32>} : memref<2x4x128xf32, #tpu.memory_space<vmem>>, vector<2x4x128xf32>,
    %c0_5 = arith.constant 0 : index
    %c0_6 = arith.constant 0 : index
    %c0_7 = arith.constant 0 : index
    %2 = vector.load %arg4[%c0_5, %c0_6, %c0_7] : memref<2x4x128xf32, #tpu.memory_space<vmem>>, vector<2x4x128xf32>
    %c0_8 = arith.constant 0 : index
    %c0_9 = arith.constant 0 : index
    %c0_10 = arith.constant 0 : index
    %3 = vector.load %arg6[%c0_8, %c0_9, %c0_10] : memref<2x4x128xf32, #tpu.memory_space<vmem>>, vector<2x4x128xf32>
    tpu.vector_store %arg6[%c0_8, %c0_9, %c0_10], %2 {strides = array<i32>} : memref<2x4x128xf32, #tpu.memory_space<vmem>>, vector<2x4x128xf32>,
    return
  }
  func.func @transform_2(%arg0: i32) -> (i32, i32, i32) {
    %c0_i32 = arith.constant 0 : i32
    %c0_i32_0 = arith.constant 0 : i32
    %c0_i32_1 = arith.constant 0 : i32
    %c0_i32_2 = arith.constant 0 : i32
    return %c0_i32, %c0_i32_0, %c0_i32_1 : i32, i32, i32
  }
  func.func @transform_3(%arg0: i32) -> (i32, i32, i32) {
    %c0_i32 = arith.constant 0 : i32
    %c0_i32_0 = arith.constant 0 : i32
    %c0_i32_1 = arith.constant 0 : i32
    %c0_i32_2 = arith.constant 0 : i32
    return %c0_i32, %c0_i32_0, %c0_i32_1 : i32, i32, i32
  }
  func.func @transform_4(%arg0: i32) -> (i32, i32, i32) {
    %c1_i32 = arith.constant 1 : i32
    %c0_i32 = arith.constant 0 : i32
    %c0_i32_0 = arith.constant 0 : i32
    %c0_i32_1 = arith.constant 0 : i32
    return %c1_i32, %c0_i32, %c0_i32_0 : i32, i32, i32
  }
  func.func @transform_5(%arg0: i32) -> (i32, i32, i32) {
    %c1_i32 = arith.constant 1 : i32
    %c0_i32 = arith.constant 0 : i32
    %c0_i32_0 = arith.constant 0 : i32
    %c0_i32_1 = arith.constant 0 : i32
    return %c1_i32, %c0_i32, %c0_i32_0 : i32, i32, i32
  }
}

</mosaic_0001>

<bundles_post_ra>
// kernel: tpu_custom_call.1
= control target key start
LH: loop header
LB: loop body
LE: loop exit
PB: predicated region body
PF: predicated region fallthrough
CT: control target
= control target key end

     0   :  { %11 = vsyncpa [#allocation3], 0  ;;  %s187_s0 = inlined_call_operand.hbm [shape: f32[8,4,128], index: 0, kind: input, shape index: {}, may-alias: {0,4}]   ;;  %s188_s1 = inlined_call_operand.hbm [shape: f32[8,4,128], index: 1, kind: input, shape index: {}, may-alias: {1,5}]   ;;  %s189_s2 = inlined_call_operand.vmem [shape: f32[2,4,128], index: 2, kind: input, shape index: {}]   ;;  %s190_s3 = inlined_call_operand.vmem [shape: f32[2,4,128], index: 3, kind: input, shape index: {}]   ;;  %s191_s4 = inlined_call_operand.hbm [shape: f32[8,4,128], index: 4, kind: output, shape index: {0}, may-alias: {0,4}]   ;;  %s192_s5 = inlined_call_operand.hbm [shape: f32[8,4,128], index: 5, kind: output, shape index: {1}, may-alias: {1,5}]  }
   0x1   :  { %v17_v0 = vld [vmem:[%s189_s2] sm:$0xff]   ;;  %s160_s22 = scalar_lea.hbm %s191_s4, 128 }
   0x2   :  { %v21_v1 = vld [vmem:[%s190_s3] sm:$0xff]  }
   0x3   :  { %12 = vsyncpa [#allocation5], 0  ;;  %19 = vst [vmem:[#allocation2] sm:$0xff] %v17_v0   ;;  %s117_s23 = smov [#allocation2]  }
   0x4   :  { %23 = vst [vmem:[#allocation4] sm:$0xff] %v21_v1   ;;  %s31_s24 = sshll.u32 %s117_s23, 4  ;;  %s32_s24 = int_to_ptr.vmem [resolvable:$true] %s31_s24 }
   0x5   :  { %s63_s25 = scalar_lea.vmem %s32_s24, 128  ;;  %p68_p1 = scmp.lt.s32.totalorder %s32_s24, %s32_s24 }
   0x6   :  { %p64_p0 = scmp.ne.s32.totalorder %s32_s24, %s63_s25  ;;  %p69_p2 = scmp.lt.s32.totalorder %s63_s25, %s63_s25 }
   0x8   :  { %p70_p3 = por %p69_p2, %p68_p1 }
   0xa   :  { %p71_p4 = pnand %p70_p3, %p64_p0 }
   0xc   :  { %74 = shalt.err (!%p71_p4)
}
   0xd   :  { %s87_s26 = scalar_lea.hbm %s191_s4, 256  ;;  %s77_s29 = scalar_lea.hbm %s191_s4, 512 }
   0xe   :  { %p76_p5 = scmp.ne.s32.totalorder %s160_s22, %s87_s26  ;;  %p78_p6 = scmp.lt.u32.totalorder %s160_s22, %s191_s4 }
   0xf   :  { %p79_p7 = scmp.lt.u32.totalorder %s77_s29, %s87_s26  ;;  %p81_p9 = scmp.lt.u32.totalorder %s87_s26, %s160_s22 }
  0x11   :  { %p80_p8 = por %p79_p7, %p78_p6 }
  0x13   :  { %p82_p10 = por %p81_p9, %p80_p8 }
  0x15   :  { %p83_p11 = pnand %p82_p10, %p76_p5 }
  0x17   :  { %86 = shalt.err (!%p83_p11)
}
  0x18   :  { %s118_s7 = smov 64   ;;  %s119_s8 = smov 4  }
  0x19   :  { %37 = dma.vmem_to_hbm [thread:$0]  %s32_s24, 128, %s160_s22, [#allocation3], %s118_s7, %s118_s7, %s119_s8  }
  0x1a   :  { %s43_s11 = scalar_lea.hbm %s192_s5, 128  ;;  %s120_s12 = smov [#allocation4]  }
  0x1b   :  { %s44_s13 = sshll.u32 %s120_s12, 4  ;;  %s45_s13 = int_to_ptr.vmem [resolvable:$true] %s44_s13 }
  0x1c   :  { %s88_s14 = scalar_lea.vmem %s45_s13, 128  ;;  %p93_p13 = scmp.lt.s32.totalorder %s45_s13, %s45_s13 }
  0x1d   :  { %p89_p12 = scmp.ne.s32.totalorder %s45_s13, %s88_s14  ;;  %p94_p0 = scmp.lt.s32.totalorder %s88_s14, %s88_s14 }
  0x1f   :  { %p95_p1 = por %p94_p0, %p93_p13 }
  0x21   :  { %p96_p2 = pnand %p95_p1, %p89_p12 }
  0x23   :  { %99 = shalt.err (!%p96_p2)
}
  0x24   :  { %s112_s16 = scalar_lea.hbm %s192_s5, 256  ;;  %s102_s19 = scalar_lea.hbm %s192_s5, 512 }
  0x25   :  { %p101_p3 = scmp.ne.s32.totalorder %s43_s11, %s112_s16  ;;  %p103_p4 = scmp.lt.u32.totalorder %s43_s11, %s192_s5 }
  0x26   :  { %p104_p5 = scmp.lt.u32.totalorder %s102_s19, %s112_s16  ;;  %p106_p7 = scmp.lt.u32.totalorder %s112_s16, %s43_s11 }
  0x28   :  { %p105_p6 = por %p104_p5, %p103_p4 }
  0x2a   :  { %p107_p8 = por %p106_p7, %p105_p6 }
  0x2c   :  { %p108_p9 = pnand %p107_p8, %p101_p3 }
  0x2e   :  { %111 = shalt.err (!%p108_p9)
}
  0x2f   :  { %50 = dma.vmem_to_hbm [thread:$0]  %s45_s13, 128, %s43_s11, [#allocation5], %s118_s7, %s118_s7, %s119_s8  }
  0x30   :  { %113 = dma.done.wait [#allocation3], 128  }
  0x31   :  { %114 = vsyncadd [#allocation3], 4294967168 }
  0x32   :  { %115 = dma.done.wait [#allocation5], 128  }
  0x33   :  { %116 = vsyncadd [#allocation5], 4294967168 }
  0x34   :  { %57 = vsyncpa [#allocation3], 1 }
  0x35   :  { %58 = vsyncpa [#allocation5], 1 }

</bundles_post_ra>
